<compile_context>
chip_gen: v7x
topology: tpu7x:2x2x1
jax: 0.10.0
libtpu: 0.0.40
codegen_flags: <defaults>
</compile_context>

<pallas_src>
import jax
import jax.numpy as jnp
from jax.experimental import pallas as pl
from jax.experimental.pallas import tpu as pltpu


def _round_up(x, m):
    return ((x + m - 1) // m) * m


def _neg_fodf_kernel(x_ref, bt_ref, scale_ref, out_ref):
    """One voxel tile: fodf = X @ B_reg.T, threshold mask, per-direction partial sums."""
    x = x_ref[...]                                     # (TN, Cp) f32, zero-padded SH coeffs
    bt = bt_ref[...]                                   # (Cp, Dp) f32, zero-padded B_reg.T
    fodf = jnp.dot(x, bt, preferred_element_type=jnp.float32)   # (TN, Dp) on the MXU
    thr = scale_ref[0, 0] * x[:, 0:1]                  # B_reg[0,0] * tau * fodf_sh[..., 0:1]
    contrib = jnp.where(fodf < thr, fodf * fodf, jnp.float32(0.0))
    # Only a sublane reduction per step; the store is lane-dense (Dp = multiple of 128).
    out_ref[...] = jnp.sum(contrib, axis=0, keepdims=True)      # (1, Dp)


def negative_fodf_loss(fodf_sh, B_reg, mask=None, *, tau=0.1, size=3, method="center"):
    """Pallas implementation of NegativefODFLoss.forward. Returns an f32 scalar.

    `mask` is accepted for signature parity but is unused (exactly as in the PyTorch forward).
    """
    if method != "center":
        # TODO(synk): 'random' subsampling uses host-side np.random.choice gather; not implemented.
        raise NotImplementedError("only method='center' is implemented")

    B = fodf_sh.shape[0]
    px, py, pz = fodf_sh.shape[1:4]
    C = fodf_sh.shape[-1]
    D = B_reg.shape[0]
    s = size

    # Center subsample; clipped slicing matches PyTorch (px-s:px+s clamps to px -> s voxels/axis).
    sub = fodf_sh[:, px - s:px + s, py - s:py + s, pz - s:pz + s, :]
    sx, sy, sz = sub.shape[1:4]
    n_vox = B * sx * sy * sz

    x2d = sub.reshape(n_vox, C).astype(jnp.float32)
    bt = jnp.transpose(B_reg).astype(jnp.float32)      # (C, D)

    # TPU-friendly padding: lane (last) dims to multiples of 128, voxel rows to the tile size.
    Cp = _round_up(C, 128)
    Dp = _round_up(D, 128)
    TN = 256
    if n_vox <= TN:
        TN = max(8, _round_up(n_vox, 8))
    Np = _round_up(n_vox, TN)
    n_tiles = Np // TN

    # Zero padding is exact: padded voxel rows / direction columns give fodf == 0 -> fodf**2 == 0.
    x_p = jnp.zeros((Np, Cp), jnp.float32).at[:n_vox, :C].set(x2d)
    bt_p = jnp.zeros((Cp, Dp), jnp.float32).at[:C, :D].set(bt)
    scale = (B_reg[0, 0].astype(jnp.float32) * jnp.float32(tau)).reshape(1, 1)

    flops = 2 * Np * Cp * Dp + 3 * Np * Dp
    bytes_accessed = x_p.size * 4 + bt_p.size * 4 + n_tiles * Dp * 4

    partials = pl.pallas_call(
        _neg_fodf_kernel,
        out_shape=jax.ShapeDtypeStruct((n_tiles, Dp), jnp.float32),
        grid=(n_tiles,),
        in_specs=[
            pl.BlockSpec((TN, Cp), lambda i: (i, 0)),           # voxel tile
            pl.BlockSpec((Cp, Dp), lambda i: (0, 0)),           # B_reg.T, resident across tiles
            pl.BlockSpec(memory_space=pltpu.MemorySpace.SMEM),  # scalar threshold scale
        ],
        out_specs=pl.BlockSpec((1, Dp), lambda i: (i, 0)),      # lane-dense per-tile partials
        compiler_params=pltpu.CompilerParams(
            dimension_semantics=("parallel",)),                 # tiles independent -> megacore OK
        cost_estimate=pl.CostEstimate(
            flops=flops, transcendentals=0, bytes_accessed=bytes_accessed),
    )(x_p, bt_p, scale)

    return jnp.sum(partials)


def negative_fodf_loss_ref(fodf_sh, B_reg, tau=0.1, size=3):
    """Pure-JAX reference (full-f32 matmul via broadcast-sum, independent of matmul precision)."""
    px, py, pz = fodf_sh.shape[1:4]
    s = size
    sub = fodf_sh[:, px - s:px + s, py - s:py + s, pz - s:pz + s, :].astype(jnp.float32)
    bt = jnp.transpose(B_reg).astype(jnp.float32)               # (C, D)
    fodf = jnp.sum(sub[..., :, None] * bt, axis=-2)             # (..., D)
    thr = B_reg[0, 0].astype(jnp.float32) * sub[..., 0:1] * jnp.float32(tau)
    # mean((fodf[sel]**2).sum(-1)) with a full-tuple fancy index == sum of squares over selection.
    return jnp.sum(jnp.where(fodf < thr, fodf, 0.0) ** 2)


if __name__ == "__main__":
    key = jax.random.PRNGKey(0)
    k1, k2 = jax.random.split(key)

    # Small shapes consistent with the module: [B, X, Y, Z, C_sh] volume of SH coefficients.
    B, X, Y, Z = 2, 16, 16, 16
    sh_order = 8
    C = (sh_order + 1) * (sh_order + 2) // 2        # 45 symmetric SH coefficients
    n_dirs = 362                                    # symmetric362 sphere

    fodf_sh = jax.random.normal(k1, (B, X, Y, Z, C), dtype=jnp.float32)
    # Surrogate for the precomputed (lambda-scaled) B_reg parameter; the real module builds it
    # from dipy's sphere / SH machinery at __init__ time (init-time, not part of forward).
    B_reg = 0.1 * jax.random.normal(k2, (n_dirs, C), dtype=jnp.float32)
    mask = jnp.ones((B, X, Y, Z), dtype=jnp.float32)   # unused by forward, kept for parity

    out = negative_fodf_loss(fodf_sh, B_reg, mask, tau=0.1, size=3, method="center")
    out = jax.block_until_ready(out)

    ref = negative_fodf_loss_ref(fodf_sh, B_reg, tau=0.1, size=3)
    assert jnp.allclose(out, ref, rtol=5e-3, atol=1e-3), (out, ref)

    print("KERNEL_OK")
</pallas_src>

<mosaic_0001>
module attributes {stable_mosaic.version = 11 : i64} {
  func.func @_neg_fodf_kernel(%arg0: i32, %arg1: memref<56x128xf32, #tpu.memory_space<vmem>>, %arg2: memref<128x384xf32, #tpu.memory_space<vmem>>, %arg3: memref<1x1xf32, #tpu.memory_space<smem>>, %arg4: memref<1x384xf32, #tpu.memory_space<vmem>>) attributes {dimension_semantics = [#tpu.dimension_semantics<parallel>], iteration_bounds = array<i64: 1>, scalar_prefetch = 0 : i64, scratch_operands = 0 : i64, tpu.core_type = #tpu.core_type<tc>, window_params = [{transform_indices = @transform_0, window_bounds = array<i64: 56, 128>}, {pipeline_mode = #tpu.pipeline_mode<synchronous>, transform_indices = @transform_1, window_bounds = array<i64: 128, 384>}, {transform_indices = @transform_2, window_bounds = array<i64: 1, 1>}, {transform_indices = @transform_3, window_bounds = array<i64: 1, 384>}]} {
    %c0 = arith.constant 0 : index
    %c0_0 = arith.constant 0 : index
    %0 = vector.load %arg1[%c0, %c0_0] : memref<56x128xf32, #tpu.memory_space<vmem>>, vector<56x128xf32>
    %c0_1 = arith.constant 0 : index
    %c0_2 = arith.constant 0 : index
    %1 = vector.load %arg2[%c0_1, %c0_2] : memref<128x384xf32, #tpu.memory_space<vmem>>, vector<128x384xf32>
    %cst = arith.constant dense<0.000000e+00> : vector<56x384xf32>
    %2 = tpu.matmul %0, %1, %cst {dimension_numbers = #tpu.dot_dimension_numbers<[1], [0], [0], [1], [0, 0, 1, 1], [], []>} : vector<56x128xf32>, vector<128x384xf32>, vector<56x384xf32> -> vector<56x384xf32>
    %c0_3 = arith.constant 0 : index
    %c0_4 = arith.constant 0 : index
    %3 = memref.load %arg3[%c0_3, %c0_4] : memref<1x1xf32, #tpu.memory_space<smem>>
    %4 = vector.extract_strided_slice %0 {offsets = [0, 0], sizes = [56, 1], strides = [1, 1]} : vector<56x128xf32> to vector<56x1xf32>
    %5 = vector.broadcast %3 : f32 to vector<56x1xf32>
    %6 = arith.mulf %5, %4 : vector<56x1xf32>
    %7 = vector.broadcast %6 : vector<56x1xf32> to vector<56x384xf32>
    %8 = arith.cmpf olt, %2, %7 : vector<56x384xf32>
    %9 = arith.mulf %2, %2 : vector<56x384xf32>
    %cst_5 = arith.constant 0.000000e+00 : f32
    %10 = vector.broadcast %cst_5 : f32 to vector<56x384xf32>
    %11 = arith.select %8, %9, %10 : vector<56x384xi1>, vector<56x384xf32>
    %cst_6 = arith.constant dense<0.000000e+00> : vector<384xf32>
    %12 = vector.multi_reduction <add>, %11, %cst_6 [0] : vector<56x384xf32> to vector<384xf32>
    %13 = vector.shape_cast %12 : vector<384xf32> to vector<1x384xf32>
    %c0_7 = arith.constant 0 : index
    %c0_8 = arith.constant 0 : index
    %14 = vector.load %arg4[%c0_7, %c0_8] : memref<1x384xf32, #tpu.memory_space<vmem>>, vector<1x384xf32>
    tpu.vector_store %arg4[%c0_7, %c0_8], %13 {strides = array<i32>} : memref<1x384xf32, #tpu.memory_space<vmem>>, vector<1x384xf32>,
    return
  }
  func.func @transform_0(%arg0: i32) -> (i32, i32) {
    %c0_i32 = arith.constant 0 : i32
    %c0_i32_0 = arith.constant 0 : i32
    return %arg0, %c0_i32 : i32, i32
  }
  func.func @transform_1(%arg0: i32) -> (i32, i32) {
    %c0_i32 = arith.constant 0 : i32
    %c0_i32_0 = arith.constant 0 : i32
    %c0_i32_1 = arith.constant 0 : i32
    return %c0_i32, %c0_i32_0 : i32, i32
  }
  func.func @transform_2(%arg0: i32) -> (i32, i32) {
    %c0_i32 = arith.constant 0 : i32
    %c0_i32_0 = arith.constant 0 : i32
    %c0_i32_1 = arith.constant 0 : i32
    return %c0_i32, %c0_i32_0 : i32, i32
  }
  func.func @transform_3(%arg0: i32) -> (i32, i32) {
    %c0_i32 = arith.constant 0 : i32
    %c0_i32_0 = arith.constant 0 : i32
    return %arg0, %c0_i32 : i32, i32
  }
}

</mosaic_0001>

<bundles_post_ra>
// kernel: tpu_custom_call.1
= control target key start
LH: loop header
LB: loop body
LE: loop exit
PB: predicated region body
PF: predicated region fallthrough
CT: control target
= control target key end

     0   :  { %9 = vsyncpa [#allocation4], 0  ;;  %s821_s0 = inlined_call_operand.hbm [shape: f32[56,128], index: 0, kind: input, shape index: {}]   ;;  %s822_s1 = inlined_call_operand.hbm [shape: f32[128,384], index: 1, kind: input, shape index: {}]   ;;  %s823_s2 = inlined_call_operand.<no memory space> [shape: f32[1,1], index: 2, kind: input, shape index: {}]   ;;  %s824_s3 = inlined_call_operand.hbm [shape: f32[1,384], index: 3, kind: output, shape index: {}]  }
   0x1   :  { %10 = vsyncpa [#allocation7], 0 }
   0x2   :  { %11 = vsyncpa [#allocation5], 0  ;;  %s715_s12 = smov [#allocation3]   ;;  %s643_s16 = scalar_lea.hbm %s821_s0, 896 }
   0x3   :  { %s17_s13 = sshll.u32 %s715_s12, 4  ;;  %p644_p0 = scmp.ne.s32.totalorder %s821_s0, %s643_s16  ;;  %s18_s13 = int_to_ptr.vmem [resolvable:$true] %s17_s13 }
   0x4   :  { %p647_p1 = scmp.lt.u32.totalorder %s643_s16, %s821_s0 }
   0x6   :  { %p649_p2 = pnand %p647_p1, %p644_p0 }
   0x8   :  { %652 = shalt.err (!%p649_p2)
}
   0x9   :  { %s653_s21 = scalar_lea.vmem %s18_s13, 896  ;;  %p658_p4 = scmp.lt.s32.totalorder %s18_s13, %s18_s13 }
   0xa   :  { %p654_p3 = scmp.ne.s32.totalorder %s18_s13, %s653_s21  ;;  %p659_p5 = scmp.lt.s32.totalorder %s653_s21, %s653_s21 }
   0xc   :  { %p660_p6 = por %p659_p5, %p658_p4 }
   0xe   :  { %p661_p7 = pnand %p660_p6, %p654_p3 }
  0x10   :  { %664 = shalt.err (!%p661_p7)
}
  0x11   :  { %s716_s22 = smov 128   ;;  %s717_s23 = smov 8  }
  0x12   :  { %23 = dma.hbm_to_vmem [thread:$0]  %s821_s0, 896, %s18_s13, [#allocation4], %s716_s22, %s716_s22, %s717_s23  }
  0x13   :  { %s718_s26 = smov [#allocation6]   ;;  %s665_s30 = scalar_lea.hbm %s822_s1, 6144 }
  0x14   :  { %s29_s27 = sshll.u32 %s718_s26, 4  ;;  %p666_p8 = scmp.ne.s32.totalorder %s822_s1, %s665_s30  ;;  %s30_s27 = int_to_ptr.vmem [resolvable:$true] %s29_s27 }
  0x15   :  { %p669_p9 = scmp.lt.u32.totalorder %s665_s30, %s822_s1 }
  0x17   :  { %p671_p10 = pnand %p669_p9, %p666_p8 }
  0x19   :  { %674 = shalt.err (!%p671_p10)
}
  0x1a   :  { %s675_s8 = scalar_lea.vmem %s30_s27, 6144  ;;  %p680_p12 = scmp.lt.s32.totalorder %s30_s27, %s30_s27 }
  0x1b   :  { %p676_p11 = scmp.ne.s32.totalorder %s30_s27, %s675_s8  ;;  %p681_p13 = scmp.lt.s32.totalorder %s675_s8, %s675_s8 }
  0x1d   :  { %p682_p0 = por %p681_p13, %p680_p12 }
  0x1f   :  { %p683_p1 = pnand %p682_p0, %p676_p11 }
  0x21   :  { %686 = shalt.err (!%p683_p1)
}
  0x22   :  { %s719_s0 = smov 384   ;;  %s720_s9 = smov 24  }
  0x23   :  { %35 = dma.hbm_to_vmem [thread:$0]  %s822_s1, 6144, %s30_s27, [#allocation7], %s719_s0, %s719_s0, %s720_s9  }
  0x24   :  { %709 = dma.done.wait [#allocation4], 896  }
  0x25   :  { %710 = vsyncadd [#allocation4], 4294966400 }
  0x26   :  { %711 = dma.done.wait [#allocation7], 6144  }
  0x27   :  { %712 = vsyncadd [#allocation7], 4294961152  ;;  %v721_v0 = vmov 0.0|0.0   ;;  %vm722_vm0 = vmmov 0   ;;  %v723_v1 = vmov 0.0   ;;  %v724_v2 = vmov 0  }
  0x28   :  { %605 = vmatprep.subr.bf16.mxu1 %v721_v0  ;;  %552 = vmatprep.mubr.msk.f32.mxu1 %vm722_vm0, %v723_v1  ;;  %v52_v3 = vld [vmem:[#allocation6 + $0x8] sm:$0xff]  ;;  %v55_v4 = vld [vmem:[#allocation6 + $0x20] sm:$0xff]  ;;  %v53_v5 = vld [vmem:[#allocation6 + $0x10] sm:$0xff]  ;;  %v307_v48 = vstv %s823_s2  ;;  %s726_s2 = smov [#allocation8]  }
  0x29   :  { %163 = vmatprep.mubr.f32.mxu0 %v723_v1  ;;  %641 = vset.pattern.permute.xlu0 %v724_v2  ;;  %v573_v6 = vpack.c.bf16 %v55_v4, %v52_v3  ;;  %v56_v7 = vld [vmem:[#allocation6 + $0x28] sm:$0xff]  ;;  %v51_v8 = vld [vmem:[#allocation6] sm:$0xff]  ;;  %v54_v9 = vld [vmem:[#allocation6 + $0x18] sm:$0xff]  ;;  %s487_s13 = sshll.u32 %s726_s2, 4  ;;  %s488_s13 = int_to_ptr.vmem [resolvable:$true] %s487_s13 }
  0x2a   :  { %642 = vset.pattern.permute.xlu1 %v724_v2  ;;  %v606_v10 = vpack.c.bf16 %v56_v7, %v53_v5  ;;  %v575_v11 = vpack.c.bf16 %v54_v9, %v51_v8  ;;  %v58_v12 = vld [vmem:[#allocation6 + $0x38] sm:$0xff]  ;;  %v61_v13 = vld [vmem:[#allocation6 + $0x50] sm:$0xff]  ;;  %v59_v14 = vld [vmem:[#allocation6 + $0x40] sm:$0xff]  ;;  %s687_s14 = scalar_lea.vmem %s488_s13, 48  ;;  %s691_s15 = scalar_lea.vmem %s488_s13, 64 }
  0x2b   :  { %574 = vmatprep.subr.bf16.mxu0 %v573_v6  ;;  %v577_v15 = vpack.c.bf16 %v61_v13, %v58_v12  ;;  %v62_v16 = vld [vmem:[#allocation6 + $0x58] sm:$0xff]  ;;  %v57_v17 = vld [vmem:[#allocation6 + $0x30] sm:$0xff]  ;;  %v60_v18 = vld [vmem:[#allocation6 + $0x48] sm:$0xff]  ;;  %p688_p2 = scmp.ne.s32.totalorder %s488_s13, %s687_s14  ;;  %p692_p3 = scmp.lt.s32.totalorder %s488_s13, %s488_s13 }
  0x2c   :  { %607 = vmatpush3.bf16.msra.mxu1 %v606_v10  ;;  %576 = vmatpush1.bf16.msra.mxu0 %v575_v11  ;;  %v609_v19 = vpack.c.bf16 %v62_v16, %v59_v14  ;;  %v579_v20 = vpack.c.bf16 %v60_v18, %v57_v17  ;;  %v64_v21 = vld [vmem:[#allocation6 + $0x68] sm:$0xff]  ;;  %v67_v22 = vld [vmem:[#allocation6 + $0x80] sm:$0xff]  ;;  %v65_v23 = vld [vmem:[#allocation6 + $0x70] sm:$0xff]  ;;  %p693_p4 = scmp.lt.s32.totalorder %s691_s15, %s687_s14 }
  0x2d   :  { %608 = vmatprep.subr.bf16.mxu1 %v721_v0  ;;  %578 = vmatprep.subr.bf16.mxu0 %v577_v15  ;;  %v581_v24 = vpack.c.bf16 %v67_v22, %v64_v21  ;;  %v68_v25 = vld [vmem:[#allocation6 + $0x88] sm:$0xff]  ;;  %v63_v26 = vld [vmem:[#allocation6 + $0x60] sm:$0xff]  ;;  %v66_v27 = vld [vmem:[#allocation6 + $0x78] sm:$0xff] }
  0x2e   :  { %v70_v28 = vld [vmem:[#allocation6 + $0x98] sm:$0xff]  ;;  %v73_v29 = vld [vmem:[#allocation6 + $0xb0] sm:$0xff]  ;;  %v612_v30 = vpack.c.bf16 %v68_v25, %v65_v23  ;;  %v583_v31 = vpack.c.bf16 %v66_v27, %v63_v26  ;;  %v71_v32 = vld [vmem:[#allocation6 + $0xa0] sm:$0xff]  ;;  %p694_p5 = por %p693_p4, %p692_p3 }
  0x2f   :  { %v585_v33 = vpack.c.bf16 %v73_v29, %v70_v28  ;;  %v74_v34 = vld [vmem:[#allocation6 + $0xb8] sm:$0xff]  ;;  %v69_v35 = vld [vmem:[#allocation6 + $0x90] sm:$0xff]  ;;  %v72_v36 = vld [vmem:[#allocation6 + $0xa8] sm:$0xff] }
  0x30   :  { %610 = vmatpush3.bf16.msra.mxu1 %v609_v19  ;;  %580 = vmatpush1.bf16.msra.mxu0 %v579_v20  ;;  %v76_v37 = vld [vmem:[#allocation6 + $0xc8] sm:$0xff]  ;;  %v79_v38 = vld [vmem:[#allocation6 + $0xe0] sm:$0xff]  ;;  %v615_v39 = vpack.c.bf16 %v74_v34, %v71_v32  ;;  %v587_v40 = vpack.c.bf16 %v72_v36, %v69_v35  ;;  %v77_v41 = vld [vmem:[#allocation6 + $0xd0] sm:$0xff]  ;;  %p695_p6 = pnand %p694_p5, %p688_p2 }
  0x31   :  { %611 = vmatprep.subr.bf16.mxu1 %v721_v0  ;;  %582 = vmatprep.subr.bf16.mxu0 %v581_v24  ;;  %v589_v42 = vpack.c.bf16 %v79_v38, %v76_v37  ;;  %v80_v43 = vld [vmem:[#allocation6 + $0xe8] sm:$0xff]  ;;  %v75_v44 = vld [vmem:[#allocation6 + $0xc0] sm:$0xff]  ;;  %v78_v45 = vld [vmem:[#allocation6 + $0xd8] sm:$0xff] }
  0x32   :  { %v82_v46 = vld [vmem:[#allocation6 + $0xf8] sm:$0xff]  ;;  %v85_v47 = vld [vmem:[#allocation6 + $0x110] sm:$0xff]  ;;  %v83_v49 = vld [vmem:[#allocation6 + $0x100] sm:$0xff]  ;;  %v618_v50 = vpack.c.bf16 %v80_v43, %v77_v41  ;;  %v591_v51 = vpack.c.bf16 %v78_v45, %v75_v44 }
  0x33   :  { %v86_v52 = vld [vmem:[#allocation6 + $0x118] sm:$0xff]  ;;  %v44_v53 = vld [vmem:[#allocation3] sm:$0xff]  ;;  %v593_v55 = vpack.c.bf16 %v85_v47, %v82_v46  ;;  %v81_v56 = vld [vmem:[#allocation6 + $0xf0] sm:$0xff] }
  0x34   :  { %613 = vmatpush3.bf16.msra.mxu1 %v612_v30  ;;  %584 = vmatpush1.bf16.msra.mxu0 %v583_v31  ;;  %v781_v54 = vld [vmem:[#allocation3 + $0x10] sm:$0xff]  ;;  %v84_v57 = vld [vmem:[#allocation6 + $0x108] sm:$0xff]  ;;  %v308_v59 = vmul.f32 %v307_v48, %v44_v53  ;;  %v91_v61 = vld [vmem:[#allocation6 + $0x140] sm:$0xff]  ;;  %v621_v4 = vpack.c.bf16 %v86_v52, %v83_v49 }
  0x35   :  { %614 = vmatprep.subr.bf16.mxu1 %v721_v0  ;;  %586 = vmatprep.subr.bf16.mxu0 %v585_v33  ;;  %v88_v58 = vld [vmem:[#allocation6 + $0x128] sm:$0xff]  ;;  %v310_v60 = vmul.f32 %v307_v48, %v781_v54  ;;  %v45_v62 = vld [vmem:[#allocation3 + $0x8] sm:$0xff]  ;;  %v47_v63 = vld [vmem:[#allocation3 + $0x18] sm:$0xff]  ;;  %v595_v5 = vpack.c.bf16 %v84_v57, %v81_v56 }
  0x36   :  { %317 = vperm.xlu0 %641, %v308_v59   ;;  %v309_v2 = vmul.f32 %v307_v48, %v45_v62  ;;  %v311_v3 = vmul.f32 %v307_v48, %v47_v63  ;;  %v89_v6 = vld [vmem:[#allocation6 + $0x130] sm:$0xff]  ;;  %v92_v7 = vld [vmem:[#allocation6 + $0x148] sm:$0xff]  ;;  %v597_v8 = vpack.c.bf16 %v91_v61, %v88_v58  ;;  %v87_v9 = vld [vmem:[#allocation6 + $0x120] sm:$0xff] }
  0x37   :  { %327 = vperm.xlu1 %642, %v310_v60   ;;  %v90_v10 = vld [vmem:[#allocation6 + $0x138] sm:$0xff]  ;;  %v97_v12 = vld [vmem:[#allocation6 + $0x170] sm:$0xff]  ;;  %v48_v13 = vld [vmem:[#allocation3 + $0x20] sm:$0xff]  ;;  %v624_v17 = vpack.c.bf16 %v92_v7, %v89_v6 }
  0x38   :  { %616 = vmatpush3.bf16.msra.mxu1 %v615_v39  ;;  %588 = vmatpush1.bf16.msra.mxu0 %v587_v40  ;;  %v94_v11 = vld [vmem:[#allocation6 + $0x158] sm:$0xff]  ;;  %v49_v14 = vld [vmem:[#allocation3 + $0x28] sm:$0xff]  ;;  %v312_v15 = vmul.f32 %v307_v48, %v48_v13  ;;  %v599_v18 = vpack.c.bf16 %v90_v10, %v87_v9  ;;  %v95_v19 = vld [vmem:[#allocation6 + $0x160] sm:$0xff] }
  0x39   :  { %617 = vmatprep.subr.bf16.mxu1 %v721_v0  ;;  %590 = vmatprep.subr.bf16.mxu0 %v589_v42  ;;  %v313_v16 = vmul.f32 %v307_v48, %v49_v14  ;;  %v601_v20 = vpack.c.bf16 %v97_v12, %v94_v11  ;;  %v98_v21 = vld [vmem:[#allocation6 + $0x178] sm:$0xff]  ;;  %v93_v22 = vld [vmem:[#allocation6 + $0x150] sm:$0xff]  ;;  %v96_v23 = vld [vmem:[#allocation6 + $0x168] sm:$0xff] }
  0x3a   :  { %322 = vperm.xlu0 %641, %v309_v2   ;;  %v50_v24 = vld [vmem:[#allocation3 + $0x30] sm:$0xff]  ;;  %v627_v26 = vpack.c.bf16 %v98_v21, %v95_v19  ;;  %v603_v27 = vpack.c.bf16 %v96_v23, %v93_v22 }
  0x3b   :  { %332 = vperm.xlu1 %642, %v311_v3   ;;  %v314_v25 = vmul.f32 %v307_v48, %v50_v24 }
  0x3c   :  { %619 = vmatpush3.bf16.msra.mxu1 %v618_v50  ;;  %592 = vmatpush1.bf16.msra.mxu0 %v591_v51 }
  0x3d   :  { %620 = vmatprep.subr.bf16.mxu1 %v721_v0  ;;  %594 = vmatprep.subr.bf16.mxu0 %v593_v55 }
  0x3e   :  { %337 = vperm.xlu0 %641, %v312_v15  }
  0x3f   :  { %342 = vperm.xlu1 %642, %v313_v16  }
  0x40   :  { %622 = vmatpush3.bf16.msra.mxu1 %v621_v4  ;;  %596 = vmatpush1.bf16.msra.mxu0 %v595_v5 }
  0x41   :  { %623 = vmatprep.subr.bf16.mxu1 %v721_v0  ;;  %598 = vmatprep.subr.bf16.mxu0 %v597_v8 }
  0x42   :  { %347 = vperm.xlu0 %641, %v314_v25  }
  0x44   :  { %625 = vmatpush3.bf16.msra.mxu1 %v624_v17  ;;  %600 = vmatpush1.bf16.msra.mxu0 %v599_v18 }
  0x45   :  { %626 = vmatprep.subr.bf16.mxu1 %v721_v0  ;;  %602 = vmatprep.subr.bf16.mxu0 %v601_v20 }
  0x48   :  { %628 = vmatpush3.bf16.msra.mxu1 %v627_v26  ;;  %604 = vmatpush1.bf16.msra.mxu0 %v603_v27 }
  0x4b   :  { %553 = vmatmul.mubr.f32.vlgmr.msra.gmra.mrb[0].mxu1 %v44_v53  ;;  %164 = vmatmul.mubr.f32.vlgmr.msra.gmra.mrb[0].mxu0 %v44_v53 }
  0x4c   :  { %555 = vmatprep.mubr.msk.f32.mxu1 %vm722_vm0, %v723_v1  ;;  %169 = vmatprep.mubr.f32.mxu0 %v723_v1 }
  0x4f   :  { %556 = vmatmul.mubr.f32.gmra.mrb[2].mxu1 %v45_v62  ;;  %170 = vmatmul.mubr.f32.gmra.mrb[2].mxu0 %v45_v62 }
  0x50   :  { %558 = vmatprep.mubr.msk.f32.mxu1 %vm722_vm0, %v723_v1  ;;  %175 = vmatprep.mubr.f32.mxu0 %v723_v1 }
  0x53   :  { %559 = vmatmul.mubr.f32.gmra.mrb[4].mxu1 %v781_v54  ;;  %176 = vmatmul.mubr.f32.gmra.mrb[4].mxu0 %v781_v54 }
  0x54   :  { %561 = vmatprep.mubr.msk.f32.mxu1 %vm722_vm0, %v723_v1  ;;  %181 = vmatprep.mubr.f32.mxu0 %v723_v1 }
  0x57   :  { %562 = vmatmul.mubr.f32.gmra.mrb[6].mxu1 %v47_v63  ;;  %182 = vmatmul.mubr.f32.gmra.mrb[6].mxu0 %v47_v63 }
  0x58   :  { %564 = vmatprep.mubr.msk.f32.mxu1 %vm722_vm0, %v723_v1  ;;  %187 = vmatprep.mubr.f32.mxu0 %v723_v1 }
  0x5b   :  { %565 = vmatmul.mubr.f32.gmra.mrb[8].mxu1 %v48_v13  ;;  %188 = vmatmul.mubr.f32.gmra.mrb[8].mxu0 %v48_v13 }
  0x5c   :  { %567 = vmatprep.mubr.msk.f32.mxu1 %vm722_vm0, %v723_v1  ;;  %193 = vmatprep.mubr.f32.mxu0 %v723_v1 }
  0x5f   :  { %568 = vmatmul.mubr.f32.gmra.mrb[10].mxu1 %v49_v14  ;;  %194 = vmatmul.mubr.f32.gmra.mrb[10].mxu0 %v49_v14 }
  0x60   :  { %570 = vmatprep.mubr.msk.f32.mxu1 %vm722_vm0, %v723_v1  ;;  %199 = vmatprep.mubr.f32.mxu0 %v723_v1 }
  0x63   :  { %571 = vmatmul.mubr.f32.gmra.mrb[12].mxu1 %v50_v24  ;;  %200 = vmatmul.mubr.f32.gmra.mrb[12].mxu0 %v50_v24 }
  0xb5   :  { %v318_v0 = vpop.permute.xlu0 %317 }
  0xb6   :  { %v328_v35 = vpop.permute.xlu1 %327 }
  0xb9   :  { %v323_v33 = vpop.permute.xlu0 %322 }
  0xba   :  { %v333_v59 = vpop.permute.xlu1 %332 }
  0xbd   :  { %v338_v11 = vpop.permute.xlu0 %337 }
  0xbe   :  { %v343_v26 = vpop.permute.xlu1 %342 }
 0x11e   :  { %v165_v28 = vpop.f32.mrb[0].mxu0  ;;  %v272_v29 = vpop.f32.mrb[0].mxu1 }
 0x11f   :  { %v167_v30 = vpop.f32.mrb[1].mxu0  ;;  %vm352_vm1 = vcmp.lt.f32.partialorder %v272_v29, %v318_v0  ;;  %v373_v31 = vmul.f32 %v272_v29, %v272_v29  ;;  %v554_v32 = vpop.f32.mrb[1].mxu1  ;;  %v371_v34 = vmul.f32 %v165_v28, %v165_v28  ;;  %vm350_vm2 = vcmp.lt.f32.partialorder %v165_v28, %v318_v0 }
 0x120   :  { %vm351_vm3 = vcmp.lt.f32.partialorder %v167_v30, %v318_v0  ;;  %v372_v36 = vmul.f32 %v167_v30, %v167_v30 }
 0x121   :  { %v394_v37 = vsel %vm352_vm1, %v373_v31, 0.0  ;;  %v392_v44 = vsel %vm350_vm2, %v371_v34, 0.0 }
 0x122   :  { %v277_v38 = vpop.f32.mrb[2].mxu1  ;;  %v171_v39 = vpop.f32.mrb[2].mxu0  ;;  %v393_v47 = vsel %vm351_vm3, %v372_v36, 0.0 }
 0x123   :  { %v376_v40 = vmul.f32 %v277_v38, %v277_v38  ;;  %vm355_vm4 = vcmp.lt.f32.partialorder %v277_v38, %v323_v33  ;;  %vm353_vm5 = vcmp.lt.f32.partialorder %v171_v39, %v323_v33  ;;  %v374_v1 = vmul.f32 %v171_v39, %v171_v39  ;;  %v173_v41 = vpop.f32.mrb[3].mxu0  ;;  %v557_v42 = vpop.f32.mrb[3].mxu1 }
 0x124   :  { %vm354_vm6 = vcmp.lt.f32.partialorder %v173_v41, %v323_v33  ;;  %v375_v43 = vmul.f32 %v173_v41, %v173_v41  ;;  %v348_v38 = vpop.permute.xlu0 %347 }
 0x125   :  { %v397_v45 = vsel %vm355_vm4, %v376_v40, 0.0  ;;  %v395_v46 = vsel %vm353_vm5, %v374_v1, 0.0 }
 0x126   :  { %v437_v48 = vadd.f32 %v397_v45, %v394_v37  ;;  %v413_v49 = vadd.f32 %v395_v46, %v392_v44  ;;  %v396_v50 = vsel %vm354_vm6, %v375_v43, 0.0  ;;  %v282_v51 = vpop.f32.mrb[4].mxu1  ;;  %v177_v52 = vpop.f32.mrb[4].mxu0 }
 0x127   :  { %v425_v53 = vadd.f32 %v396_v50, %v393_v47  ;;  %v379_v54 = vmul.f32 %v282_v51, %v282_v51  ;;  %vm358_vm7 = vcmp.lt.f32.partialorder %v282_v51, %v328_v35  ;;  %vm356_vm8 = vcmp.lt.f32.partialorder %v177_v52, %v328_v35  ;;  %v179_v55 = vpop.f32.mrb[5].mxu0  ;;  %v560_v56 = vpop.f32.mrb[5].mxu1 }
 0x128   :  { %v377_v57 = vmul.f32 %v177_v52, %v177_v52  ;;  %vm357_vm9 = vcmp.lt.f32.partialorder %v179_v55, %v328_v35  ;;  %v378_v58 = vmul.f32 %v179_v55, %v179_v55 }
 0x129   :  { %v400_v60 = vsel %vm358_vm7, %v379_v54, 0.0 }
 0x12a   :  { %v438_v61 = vadd.f32 %v437_v48, %v400_v60  ;;  %v398_v62 = vsel %vm356_vm8, %v377_v57, 0.0  ;;  %v399_v63 = vsel %vm357_vm9, %v378_v58, 0.0  ;;  %v287_v2 = vpop.f32.mrb[6].mxu1  ;;  %v183_v3 = vpop.f32.mrb[6].mxu0 }
 0x12b   :  { %v414_v4 = vadd.f32 %v413_v49, %v398_v62  ;;  %v426_v5 = vadd.f32 %v425_v53, %v399_v63  ;;  %v382_v6 = vmul.f32 %v287_v2, %v287_v2  ;;  %vm361_vm10 = vcmp.lt.f32.partialorder %v287_v2, %v333_v59  ;;  %v185_v7 = vpop.f32.mrb[7].mxu0  ;;  %v563_v8 = vpop.f32.mrb[7].mxu1 }
 0x12c   :  { %vm359_vm11 = vcmp.lt.f32.partialorder %v183_v3, %v333_v59  ;;  %v380_v9 = vmul.f32 %v183_v3, %v183_v3  ;;  %vm360_vm12 = vcmp.lt.f32.partialorder %v185_v7, %v333_v59  ;;  %v381_v10 = vmul.f32 %v185_v7, %v185_v7 }
 0x12d   :  { %v403_v12 = vsel %vm361_vm10, %v382_v6, 0.0  ;;  %v725_v63 = vmov 1966171168   ;;  %v456_v3 = vlaneseq }
 0x12e   :  { %v439_v13 = vadd.f32 %v438_v61, %v403_v12  ;;  %v401_v14 = vsel %vm359_vm11, %v380_v9, 0.0  ;;  %v402_v15 = vsel %vm360_vm12, %v381_v10, 0.0  ;;  %v292_v16 = vpop.f32.mrb[8].mxu1  ;;  %v189_v17 = vpop.f32.mrb[8].mxu0  ;;  %v454_v2 = vunpack.c.l.s4 %v725_v63 }
 0x12f   :  { %v415_v18 = vadd.f32 %v414_v4, %v401_v14  ;;  %v427_v19 = vadd.f32 %v426_v5, %v402_v15  ;;  %vm364_vm13 = vcmp.lt.f32.partialorder %v292_v16, %v338_v11  ;;  %v385_v20 = vmul.f32 %v292_v16, %v292_v16  ;;  %v191_v21 = vpop.f32.mrb[9].mxu0  ;;  %v566_v22 = vpop.f32.mrb[9].mxu1 }
 0x130   :  { %vm362_vm14 = vcmp.lt.f32.partialorder %v189_v17, %v338_v11  ;;  %v383_v23 = vmul.f32 %v189_v17, %v189_v17  ;;  %vm363_vm15 = vcmp.lt.f32.partialorder %v191_v21, %v338_v11  ;;  %v384_v24 = vmul.f32 %v191_v21, %v191_v21 }
 0x131   :  { %v406_v25 = vsel %vm364_vm13, %v385_v20, 0.0  ;;  %v455_v10 = vunpack.c.0.s8 %v454_v2  ;;  %v457_v11 = vshrl.u32 %v456_v3, 7  ;;  %vm478_vm6 = vcmp.lt.s32.totalorder %v456_v3, 384 }
 0x132   :  { %v440_v27 = vadd.f32 %v439_v13, %v406_v25  ;;  %v404_v0 = vsel %vm362_vm14, %v383_v23, 0.0  ;;  %v405_v28 = vsel %vm363_vm15, %v384_v24, 0.0  ;;  %v297_v29 = vpop.f32.mrb[10].mxu1  ;;  %v195_v30 = vpop.f32.mrb[10].mxu0 }
 0x133   :  { %v416_v31 = vadd.f32 %v415_v18, %v404_v0  ;;  %v428_v32 = vadd.f32 %v427_v19, %v405_v28  ;;  %vm367_vm0 = vcmp.lt.f32.partialorder %v297_v29, %v343_v26  ;;  %v388_v33 = vmul.f32 %v297_v29, %v297_v29  ;;  %v197_v34 = vpop.f32.mrb[11].mxu0  ;;  %v569_v35 = vpop.f32.mrb[11].mxu1 }
 0x134   :  { %vm365_vm1 = vcmp.lt.f32.partialorder %v195_v30, %v343_v26  ;;  %v386_v36 = vmul.f32 %v195_v30, %v195_v30  ;;  %vm366_vm2 = vcmp.lt.f32.partialorder %v197_v34, %v343_v26  ;;  %v387_v37 = vmul.f32 %v197_v34, %v197_v34 }
 0x135   :  { %v409_v39 = vsel %vm367_vm0, %v388_v33, 0.0  ;;  %v458_v18 = vsub.s32 %v455_v10, %v457_v11 }
 0x136   :  { %v441_v40 = vadd.f32 %v440_v27, %v409_v39  ;;  %v407_v1 = vsel %vm365_vm1, %v386_v36, 0.0  ;;  %v408_v41 = vsel %vm366_vm2, %v387_v37, 0.0  ;;  %v302_v42 = vpop.f32.mrb[12].mxu1  ;;  %v201_v43 = vpop.f32.mrb[12].mxu0 }
 0x137   :  { %v417_v44 = vadd.f32 %v416_v31, %v407_v1  ;;  %v429_v45 = vadd.f32 %v428_v32, %v408_v41  ;;  %vm370_vm3 = vcmp.lt.f32.partialorder %v302_v42, %v348_v38  ;;  %v391_v46 = vmul.f32 %v302_v42, %v302_v42  ;;  %v203_v47 = vpop.f32.mrb[13].mxu0  ;;  %v572_v48 = vpop.f32.mrb[13].mxu1 }
 0x138   :  { %vm368_vm4 = vcmp.lt.f32.partialorder %v201_v43, %v348_v38  ;;  %v389_v49 = vmul.f32 %v201_v43, %v201_v43  ;;  %vm369_vm5 = vcmp.lt.f32.partialorder %v203_v47, %v348_v38  ;;  %v390_v50 = vmul.f32 %v203_v47, %v203_v47 }
 0x139   :  { %v412_v51 = vsel %vm370_vm3, %v391_v46, 0.0 }
 0x13a   :  { %v442_v52 = vadd.f32 %v441_v40, %v412_v51  ;;  %v410_v53 = vsel %vm368_vm4, %v389_v49, 0.0  ;;  %v411_v54 = vsel %vm369_vm5, %v390_v50, 0.0 }
 0x13b   :  { %v418_v55 = vadd.f32 %v417_v44, %v410_v53  ;;  %v430_v56 = vadd.f32 %v429_v45, %v411_v54 }
 0x13c   :  { %v443_v57 = vrot.slane %v442_v52, 4 }
 0x13d   :  { %v419_v58 = vrot.slane %v418_v55, 4  ;;  %v431_v59 = vrot.slane %v430_v56, 4 }
 0x13e   :  { %v444_v60 = vadd.f32 %v443_v57, %v442_v52 }
 0x13f   :  { %v420_v61 = vadd.f32 %v419_v58, %v418_v55  ;;  %v432_v62 = vadd.f32 %v431_v59, %v430_v56 }
 0x140   :  { %v445_v4 = vrot.slane %v444_v60, 2 }
 0x141   :  { %v421_v5 = vrot.slane %v420_v61, 2  ;;  %v433_v6 = vrot.slane %v432_v62, 2 }
 0x142   :  { %v446_v7 = vadd.f32 %v445_v4, %v444_v60 }
 0x143   :  { %v422_v8 = vadd.f32 %v421_v5, %v420_v61  ;;  %v434_v9 = vadd.f32 %v433_v6, %v432_v62 }
 0x144   :  { %v447_v12 = vrot.slane %v446_v7, 1 }
 0x145   :  { %v423_v13 = vrot.slane %v422_v8, 1  ;;  %v435_v14 = vrot.slane %v434_v9, 1 }
 0x146   :  { %v448_v15 = vadd.f32 %v447_v12, %v446_v7 }
 0x147   :  { %v424_v16 = vadd.f32 %v423_v13, %v422_v8  ;;  %v436_v17 = vadd.f32 %v435_v14, %v434_v9 }
 0x148   :  { %v466_v21 = vrot.slane %v448_v15, %v458_v18 }
 0x149   :  { %v452_v19 = vcombine.low %v424_v16, %v436_v17 }
 0x14b   :  { %v459_v20 = vrot.slane %v452_v19, %v458_v18 }
 0x14d   :  { %v467_v22 = vcombine.low %v459_v20, %v466_v21 }
 0x14f   :  { %v474_v23 = vrot.slane %v467_v22, %v458_v18 }
 0x151   :  { %480 = vst.msk [vmem:[#allocation8] sm:$0x7] %vm478_vm6, %v474_v23 }
 0x152   :  { %698 = shalt.err (!%p695_p6)
}
 0x153   :  { %s699_s18 = scalar_lea.hbm %s824_s3, 48 }
 0x154   :  { %p700_p7 = scmp.ne.s32.totalorder %s824_s3, %s699_s18  ;;  %p703_p8 = scmp.lt.u32.totalorder %s699_s18, %s824_s3 }
 0x156   :  { %p705_p9 = pnand %p703_p8, %p700_p7 }
 0x158   :  { %708 = shalt.err (!%p705_p9)
}
 0x159   :  { %490 = dma.vmem_to_hbm [thread:$0]  %s488_s13, 48, %s824_s3, [#allocation5]  }
 0x15a   :  { %713 = dma.done.wait [#allocation5], 48  }
 0x15b   :  { %714 = vsyncadd [#allocation5], 4294967248 }
 0x15c   :  { %494 = vsyncpa [#allocation4], 1 }
 0x15d   :  { %495 = vsyncpa [#allocation7], 1 }
 0x15e   :  { %496 = vsyncpa [#allocation5], 1 }

</bundles_post_ra>
